<compile_context>
chip_gen: v6e
topology: v6e:2x2x1
jax: 0.10.0
libtpu: 0.0.40
codegen_flags: <defaults>
</compile_context>

<pallas_src>
import math
import functools

import jax
import jax.numpy as jnp
from jax.experimental import pallas as pl
from jax.experimental.pallas import tpu as pltpu


def _layer_norm(v, g, b, eps):
    mu = jnp.mean(v, axis=-1, keepdims=True)
    c = v - mu
    var = jnp.mean(c * c, axis=-1, keepdims=True)
    return c * jax.lax.rsqrt(var + eps) * g + b


def _encoder_layer_kernel(T_blk, Bp, K, pad_l, eps,
                          x_ref, keep_ref,
                          w1a_ref, w1b_ref, b1a_ref, b1b_ref, wc_ref,
                          w2_ref, b2_ref, g0_ref, be0_ref,
                          wf1_ref, bf1_ref, wf2_ref, bf2_ref,
                          g1_ref, be1_ref, out_ref):
    rows = T_blk * Bp                                # interior (output) rows

    # Extended activation block: (T_blk + K - 1) time steps (conv halo baked in).
    x_ext = x_ref[...]                               # ((T_blk+K-1)*Bp, E) f32
    x_bf = x_ext.astype(jnp.bfloat16)

    # ---- linear1 split into value/gate halves + GLU (bf16 MXU, f32 acc) -----
    a = jnp.dot(x_bf, w1a_ref[...], preferred_element_type=jnp.float32) + b1a_ref[...]
    g = jnp.dot(x_bf, w1b_ref[...], preferred_element_type=jnp.float32) + b1b_ref[...]
    h = a * jax.nn.sigmoid(g)                        # nn.GLU(dim=-1)

    # ---- masked_fill(padding, 0): keep = 1 - pad_mask (0 on halo rows too) ---
    h = h * keep_ref[...].astype(jnp.float32)

    # ---- LightweightConv1dTBC: K sublane-aligned shifts of in-register h ----
    wc = wc_ref[...]                                 # (K, Cd) softmaxed taps, f32
    y = h[0:rows, :] * wc[0:1, :]
    for k in range(1, K):                            # K is a small static int
        y = y + h[k * Bp:k * Bp + rows, :] * wc[k:k + 1, :]

    # ---- linear2 + residual + LayerNorm[0] (post-norm) -----------------------
    residual = x_ext[pad_l * Bp:pad_l * Bp + rows, :]     # original x rows (f32)
    z = jnp.dot(y.astype(jnp.bfloat16), w2_ref[...],
                preferred_element_type=jnp.float32) + b2_ref[...]
    z = residual + z
    z = _layer_norm(z, g0_ref[...], be0_ref[...], eps)

    # ---- FFN + residual + LayerNorm[1] ---------------------------------------
    residual = z
    f = jnp.dot(z.astype(jnp.bfloat16), wf1_ref[...],
                preferred_element_type=jnp.float32) + bf1_ref[...]
    f = jnp.maximum(f, 0.0)
    f = jnp.dot(f.astype(jnp.bfloat16), wf2_ref[...],
                preferred_element_type=jnp.float32) + bf2_ref[...]
    z = residual + f
    out_ref[...] = _layer_norm(z, g1_ref[...], be1_ref[...], eps)


def _vmem_capacity_bytes():
    try:
        return int(pltpu.get_tpu_info().vmem_capacity_bytes)
    except Exception:
        return 64 * 1024 * 1024          # conservative (v7x-sized) fallback


def _default_time_block(T, Bp, E, Cd, Ff, K, vmem_cap):
    """Largest time tile whose double-buffered working set fits comfortably."""
    budget = int(vmem_cap * 0.55)
    resident = 2 * (3 * E * Cd + 2 * E * Ff)                    # bf16 weights
    resident += 4 * (4 * E + 2 * Cd + Ff + K * Cd)              # f32 biases/LN/taps
    budget -= resident
    # Per time step: f32 x block + bf16 keep (x2 pipeline buffers), f32 out
    # block (x2), plus in-kernel f32 temporaries (GLU halves, conv acc, FFN, LN).
    per_t = Bp * (2 * (E * 4 + 2) + 2 * E * 4 + 4 * Cd * 4 + Ff * 4 + 4 * E * 4)
    tb = budget // max(per_t, 1)
    return int(max(8, min(tb, max(T, 1))))


def lightconv_encoder_layer(x, encoder_padding_mask, params, *,
                            num_heads, kernel_size, eps=1e-5, time_block=None):
    """x: (T, B, E) float, encoder_padding_mask: (B, T) bool (1 = pad) or None."""
    T, B, E = x.shape
    K = kernel_size
    assert K % 2 == 1, "only odd kernel sizes wired up (padding_l = K//2)"
    pad_l = K // 2
    Cd = params["w2"].shape[0]                       # conv_dim
    Ff = params["wf1"].shape[1]
    R = Cd // num_heads

    Bp = -(-B // 8) * 8                              # sublane-aligned batch pad
    vmem_cap = _vmem_capacity_bytes()
    if time_block is None:
        time_block = _default_time_block(T, Bp, E, Cd, Ff, K, vmem_cap)
    T_blk = int(min(time_block, T))
    G = -(-T // T_blk)                               # grid size (time blocks)
    T_tot = G * T_blk
    W = T_blk + K - 1                                # block time window incl. halo

    # ---- glue / layout plumbing (plain XLA ops, negligible vs the kernel) ----
    xf = x.astype(jnp.float32)
    if encoder_padding_mask is None:
        keep = jnp.ones((T, B), jnp.float32)
    else:
        keep = 1.0 - encoder_padding_mask.T.astype(jnp.float32)      # (T, B)
    x_b = jnp.pad(xf, ((0, 0), (0, Bp - B), (0, 0)))
    keep_b = jnp.pad(keep, ((0, 0), (0, Bp - B)))    # padded batch -> keep = 0
    back = T_tot + K - 1 - pad_l - T
    x_p = jnp.pad(x_b, ((pad_l, back), (0, 0), (0, 0)))    # (T_tot+K-1, Bp, E)
    keep_p = jnp.pad(keep_b, ((pad_l, back), (0, 0)))

    # Overlapping per-block windows: each block carries its (K-1)-step halo so
    # the kernel never reads outside its own tile (no scratch, no carry).
    tix = jnp.arange(G)[:, None] * T_blk + jnp.arange(W)[None, :]    # (G, W)
    x_blocks = jnp.take(x_p, tix, axis=0).reshape(G, W * Bp, E)      # f32
    keep_blocks = jnp.take(keep_p, tix, axis=0).reshape(G, W * Bp, 1)
    keep_blocks = keep_blocks.astype(jnp.bfloat16)

    # Per-channel softmaxed conv taps (f32), expanded from per-head weights.
    wh = jax.nn.softmax(
        params["conv_w"].reshape(num_heads, K).astype(jnp.float32), axis=1)
    wconv = jnp.repeat(wh, R, axis=0).T                              # (K, Cd)

    bf = jnp.bfloat16
    f32 = jnp.float32
    w1 = params["w1"]
    operands = (
        x_blocks, keep_blocks,
        w1[:, :Cd].astype(bf), w1[:, Cd:].astype(bf),                # GLU halves
        params["b1"][None, :Cd].astype(f32), params["b1"][None, Cd:].astype(f32),
        wconv,
        params["w2"].astype(bf), params["b2"][None, :].astype(f32),
        params["g0"][None, :].astype(f32), params["be0"][None, :].astype(f32),
        params["wf1"].astype(bf), params["bf1"][None, :].astype(f32),
        params["wf2"].astype(bf), params["bf2"][None, :].astype(f32),
        params["g1"][None, :].astype(f32), params["be1"][None, :].astype(f32),
    )

    def _resident(a):          # constant block index -> DMA'd once, stays in VMEM
        nd = a.ndim
        return pl.BlockSpec(a.shape, lambda i: (0,) * nd)

    in_specs = [
        pl.BlockSpec((None, W * Bp, E), lambda i: (i, 0, 0)),   # x block + halo
        pl.BlockSpec((None, W * Bp, 1), lambda i: (i, 0, 0)),   # keep block
    ] + [_resident(a) for a in operands[2:]]

    out2 = pl.pallas_call(
        functools.partial(_encoder_layer_kernel, T_blk, Bp, K, pad_l, eps),
        out_shape=jax.ShapeDtypeStruct((T_tot * Bp, E), jnp.float32),
        grid=(G,),
        in_specs=in_specs,
        out_specs=pl.BlockSpec((T_blk * Bp, E), lambda i: (i, 0)),
        compiler_params=pltpu.CompilerParams(
            dimension_semantics=("parallel",),       # megacore-shardable on v7x
            vmem_limit_bytes=int(vmem_cap * 3 // 4)),
    )(*operands)

    return out2.reshape(T_tot, Bp, E)[:T, :B, :]


# ------------------------- pure-JAX reference -------------------------------
def reference_forward(x, mask, p, *, num_heads, kernel_size, eps=1e-5,
                      matmul_dtype=jnp.float32):
    """matmul_dtype=bf16 mirrors the kernel's MXU numerics (f32 accumulation)."""
    T, B, E = x.shape
    K = kernel_size
    pad_l = K // 2
    Cd = p["w2"].shape[0]
    R = Cd // num_heads

    def mm(a, w):
        return jnp.dot(a.astype(matmul_dtype), w.astype(matmul_dtype),
                       preferred_element_type=jnp.float32)

    residual = x
    a = mm(x, p["w1"][:, :Cd]) + p["b1"][:Cd]
    g = mm(x, p["w1"][:, Cd:]) + p["b1"][Cd:]
    h = a * jax.nn.sigmoid(g)
    if mask is not None:
        keep = 1.0 - mask.T.astype(jnp.float32)[..., None]           # (T, B, 1)
        h = h * keep

    w = jax.nn.softmax(p["conv_w"].reshape(num_heads, K), axis=1)
    wc = jnp.repeat(w, R, axis=0)                                    # (Cd, K)
    hp = jnp.pad(h, ((pad_l, K - 1 - pad_l), (0, 0), (0, 0)))
    y = jnp.zeros_like(h)
    for k in range(K):
        y = y + hp[k:k + T] * wc[:, k][None, None, :]

    z = residual + (mm(y, p["w2"]) + p["b2"])

    def ln(v, g_, b_):
        mu = jnp.mean(v, -1, keepdims=True)
        var = jnp.mean((v - mu) ** 2, -1, keepdims=True)
        return (v - mu) * jax.lax.rsqrt(var + eps) * g_ + b_

    z = ln(z, p["g0"], p["be0"])
    residual = z
    f = jnp.maximum(mm(z, p["wf1"]) + p["bf1"], 0.0)
    f = mm(f, p["wf2"]) + p["bf2"]
    return ln(residual + f, p["g1"], p["be1"])


# ------------------------------ setup ----------------------------------------
def xavier_uniform(key, shape, fan_in, fan_out):
    bound = math.sqrt(6.0 / (fan_in + fan_out))
    return jax.random.uniform(key, shape, jnp.float32, -bound, bound)


if __name__ == "__main__":
    T, B = 8, 2                    # seq_len, batch
    E = 32                         # encoder_embed_dim
    Cd = 32                        # encoder_conv_dim
    H = 4                          # encoder_attention_heads
    K = 3                          # conv kernel_size (odd)
    Ff = 64                        # encoder_ffn_embed_dim

    key = jax.random.PRNGKey(0)
    ks = jax.random.split(key, 10)

    params = {
        # Linear weights stored as (in, out) for right-multiplication; xavier
        # bound is symmetric in fan_in/fan_out so it matches nn.init.xavier_uniform_.
        "w1": xavier_uniform(ks[0], (E, 2 * Cd), E, 2 * Cd),
        "b1": jnp.zeros((2 * Cd,), jnp.float32),
        "conv_w": xavier_uniform(ks[1], (H, 1, K), 1 * K, H * K),   # LightweightConv
        "w2": xavier_uniform(ks[2], (Cd, E), Cd, E),
        "b2": jnp.zeros((E,), jnp.float32),
        "wf1": xavier_uniform(ks[3], (E, Ff), E, Ff),
        "bf1": jnp.zeros((Ff,), jnp.float32),
        "wf2": xavier_uniform(ks[4], (Ff, E), Ff, E),
        "bf2": jnp.zeros((E,), jnp.float32),
        "g0": jnp.ones((E,), jnp.float32), "be0": jnp.zeros((E,), jnp.float32),
        "g1": jnp.ones((E,), jnp.float32), "be1": jnp.zeros((E,), jnp.float32),
    }

    x = jax.random.normal(ks[5], (T, B, E), jnp.float32)
    # padding mask (B, T): last two positions of batch element 1 are padding
    mask = jnp.zeros((B, T), jnp.bool_).at[1, T - 2:].set(True)

    # time_block=4 -> 2-step grid: exercises the halo / tiling / pipelining path.
    out = lightconv_encoder_layer(x, mask, params, num_heads=H, kernel_size=K,
                                  time_block=4)
    out = jax.block_until_ready(out)
    assert out.shape == (T, B, E)
    assert bool(jnp.all(jnp.isfinite(out)))

    # Tight check vs a reference that uses the same bf16 MXU operand casts.
    ref_bf16 = reference_forward(x, mask, params, num_heads=H, kernel_size=K,
                                 matmul_dtype=jnp.bfloat16)
    assert jnp.allclose(out, ref_bf16, atol=2e-3, rtol=2e-3), \
        "mismatch vs matched-precision reference"

    # Sanity check vs the full-f32 reference (difference = bf16 matmul rounding).
    ref_f32 = reference_forward(x, mask, params, num_heads=H, kernel_size=K)
    assert jnp.allclose(out, ref_f32, atol=5e-2, rtol=5e-2), \
        "mismatch vs f32 reference"

    print("KERNEL_OK")
</pallas_src>

<mosaic_0001>
module attributes {stable_mosaic.version = 11 : i64} {
  func.func @_encoder_layer_kernel(%arg0: i32, %arg1: memref<1x48x32xf32, #tpu.memory_space<vmem>>, %arg2: memref<1x48x1xbf16, #tpu.memory_space<vmem>>, %arg3: memref<32x32xbf16, #tpu.memory_space<vmem>>, %arg4: memref<32x32xbf16, #tpu.memory_space<vmem>>, %arg5: memref<1x32xf32, #tpu.memory_space<vmem>>, %arg6: memref<1x32xf32, #tpu.memory_space<vmem>>, %arg7: memref<3x32xf32, #tpu.memory_space<vmem>>, %arg8: memref<32x32xbf16, #tpu.memory_space<vmem>>, %arg9: memref<1x32xf32, #tpu.memory_space<vmem>>, %arg10: memref<1x32xf32, #tpu.memory_space<vmem>>, %arg11: memref<1x32xf32, #tpu.memory_space<vmem>>, %arg12: memref<32x64xbf16, #tpu.memory_space<vmem>>, %arg13: memref<1x64xf32, #tpu.memory_space<vmem>>, %arg14: memref<64x32xbf16, #tpu.memory_space<vmem>>, %arg15: memref<1x32xf32, #tpu.memory_space<vmem>>, %arg16: memref<1x32xf32, #tpu.memory_space<vmem>>, %arg17: memref<1x32xf32, #tpu.memory_space<vmem>>, %arg18: memref<32x32xf32, #tpu.memory_space<vmem>>) attributes {dimension_semantics = [#tpu.dimension_semantics<parallel>], iteration_bounds = array<i64: 2>, scalar_prefetch = 0 : i64, scratch_operands = 0 : i64, tpu.core_type = #tpu.core_type<tc>, window_params = [{transform_indices = @transform_0, window_bounds = array<i64: 1, 48, 32>}, {transform_indices = @transform_1, window_bounds = array<i64: 1, 48, 1>}, {pipeline_mode = #tpu.pipeline_mode<synchronous>, transform_indices = @transform_2, window_bounds = array<i64: 32, 32>}, {pipeline_mode = #tpu.pipeline_mode<synchronous>, transform_indices = @transform_3, window_bounds = array<i64: 32, 32>}, {pipeline_mode = #tpu.pipeline_mode<synchronous>, transform_indices = @transform_4, window_bounds = array<i64: 1, 32>}, {pipeline_mode = #tpu.pipeline_mode<synchronous>, transform_indices = @transform_5, window_bounds = array<i64: 1, 32>}, {pipeline_mode = #tpu.pipeline_mode<synchronous>, transform_indices = @transform_6, window_bounds = array<i64: 3, 32>}, {pipeline_mode = #tpu.pipeline_mode<synchronous>, transform_indices = @transform_7, window_bounds = array<i64: 32, 32>}, {pipeline_mode = #tpu.pipeline_mode<synchronous>, transform_indices = @transform_8, window_bounds = array<i64: 1, 32>}, {pipeline_mode = #tpu.pipeline_mode<synchronous>, transform_indices = @transform_9, window_bounds = array<i64: 1, 32>}, {pipeline_mode = #tpu.pipeline_mode<synchronous>, transform_indices = @transform_10, window_bounds = array<i64: 1, 32>}, {pipeline_mode = #tpu.pipeline_mode<synchronous>, transform_indices = @transform_11, window_bounds = array<i64: 32, 64>}, {pipeline_mode = #tpu.pipeline_mode<synchronous>, transform_indices = @transform_12, window_bounds = array<i64: 1, 64>}, {pipeline_mode = #tpu.pipeline_mode<synchronous>, transform_indices = @transform_13, window_bounds = array<i64: 64, 32>}, {pipeline_mode = #tpu.pipeline_mode<synchronous>, transform_indices = @transform_14, window_bounds = array<i64: 1, 32>}, {pipeline_mode = #tpu.pipeline_mode<synchronous>, transform_indices = @transform_15, window_bounds = array<i64: 1, 32>}, {pipeline_mode = #tpu.pipeline_mode<synchronous>, transform_indices = @transform_16, window_bounds = array<i64: 1, 32>}, {transform_indices = @transform_17, window_bounds = array<i64: 32, 32>}]} {
    %c0 = arith.constant 0 : index
    %c0_0 = arith.constant 0 : index
    %c0_1 = arith.constant 0 : index
    %0 = vector.load %arg1[%c0, %c0_0, %c0_1] : memref<1x48x32xf32, #tpu.memory_space<vmem>>, vector<1x48x32xf32>
    %1 = vector.shape_cast %0 : vector<1x48x32xf32> to vector<48x32xf32>
    %2 = arith.truncf %1 : vector<48x32xf32> to vector<48x32xbf16>
    %c0_2 = arith.constant 0 : index
    %c0_3 = arith.constant 0 : index
    %3 = vector.load %arg3[%c0_2, %c0_3] : memref<32x32xbf16, #tpu.memory_space<vmem>>, vector<32x32xbf16>
    %cst = arith.constant dense<0.000000e+00> : vector<48x32xf32>
    %4 = tpu.matmul %2, %3, %cst {dimension_numbers = #tpu.dot_dimension_numbers<[1], [0], [0], [1], [0, 0, 1, 1], [], []>} : vector<48x32xbf16>, vector<32x32xbf16>, vector<48x32xf32> -> vector<48x32xf32>
    %c0_4 = arith.constant 0 : index
    %c0_5 = arith.constant 0 : index
    %5 = vector.load %arg5[%c0_4, %c0_5] : memref<1x32xf32, #tpu.memory_space<vmem>>, vector<1x32xf32>
    %6 = vector.broadcast %5 : vector<1x32xf32> to vector<48x32xf32>
    %7 = arith.addf %4, %6 : vector<48x32xf32>
    %c0_6 = arith.constant 0 : index
    %c0_7 = arith.constant 0 : index
    %8 = vector.load %arg4[%c0_6, %c0_7] : memref<32x32xbf16, #tpu.memory_space<vmem>>, vector<32x32xbf16>
    %cst_8 = arith.constant dense<0.000000e+00> : vector<48x32xf32>
    %9 = tpu.matmul %2, %8, %cst_8 {dimension_numbers = #tpu.dot_dimension_numbers<[1], [0], [0], [1], [0, 0, 1, 1], [], []>} : vector<48x32xbf16>, vector<32x32xbf16>, vector<48x32xf32> -> vector<48x32xf32>
    %c0_9 = arith.constant 0 : index
    %c0_10 = arith.constant 0 : index
    %10 = vector.load %arg6[%c0_9, %c0_10] : memref<1x32xf32, #tpu.memory_space<vmem>>, vector<1x32xf32>
    %11 = vector.broadcast %10 : vector<1x32xf32> to vector<48x32xf32>
    %12 = arith.addf %9, %11 : vector<48x32xf32>
    %13 = arith.negf %12 : vector<48x32xf32>
    %14 = math.exp %13 : vector<48x32xf32>
    %cst_11 = arith.constant 1.000000e+00 : f32
    %15 = vector.broadcast %cst_11 : f32 to vector<48x32xf32>
    %16 = arith.addf %15, %14 : vector<48x32xf32>
    %17 = arith.divf %15, %16 : vector<48x32xf32>
    %18 = arith.mulf %7, %17 : vector<48x32xf32>
    %c0_12 = arith.constant 0 : index
    %c0_13 = arith.constant 0 : index
    %c0_14 = arith.constant 0 : index
    %19 = vector.load %arg2[%c0_12, %c0_13, %c0_14] : memref<1x48x1xbf16, #tpu.memory_space<vmem>>, vector<1x48x1xbf16>
    %20 = vector.shape_cast %19 : vector<1x48x1xbf16> to vector<48x1xbf16>
    %21 = arith.extf %20 : vector<48x1xbf16> to vector<48x1xf32>
    %22 = vector.broadcast %21 : vector<48x1xf32> to vector<48x32xf32>
    %23 = arith.mulf %18, %22 : vector<48x32xf32>
    %c0_15 = arith.constant 0 : index
    %c0_16 = arith.constant 0 : index
    %24 = vector.load %arg7[%c0_15, %c0_16] : memref<3x32xf32, #tpu.memory_space<vmem>>, vector<3x32xf32>
    %25 = vector.extract_strided_slice %23 {offsets = [0, 0], sizes = [32, 32], strides = [1, 1]} : vector<48x32xf32> to vector<32x32xf32>
    %26 = vector.extract_strided_slice %24 {offsets = [0, 0], sizes = [1, 32], strides = [1, 1]} : vector<3x32xf32> to vector<1x32xf32>
    %27 = vector.broadcast %26 : vector<1x32xf32> to vector<32x32xf32>
    %28 = arith.mulf %25, %27 : vector<32x32xf32>
    %29 = vector.extract_strided_slice %23 {offsets = [8, 0], sizes = [32, 32], strides = [1, 1]} : vector<48x32xf32> to vector<32x32xf32>
    %30 = vector.extract_strided_slice %24 {offsets = [1, 0], sizes = [1, 32], strides = [1, 1]} : vector<3x32xf32> to vector<1x32xf32>
    %31 = vector.broadcast %30 : vector<1x32xf32> to vector<32x32xf32>
    %32 = arith.mulf %29, %31 : vector<32x32xf32>
    %33 = arith.addf %28, %32 : vector<32x32xf32>
    %34 = vector.extract_strided_slice %23 {offsets = [16, 0], sizes = [32, 32], strides = [1, 1]} : vector<48x32xf32> to vector<32x32xf32>
    %35 = vector.extract_strided_slice %24 {offsets = [2, 0], sizes = [1, 32], strides = [1, 1]} : vector<3x32xf32> to vector<1x32xf32>
    %36 = vector.broadcast %35 : vector<1x32xf32> to vector<32x32xf32>
    %37 = arith.mulf %34, %36 : vector<32x32xf32>
    %38 = arith.addf %33, %37 : vector<32x32xf32>
    %39 = vector.extract_strided_slice %1 {offsets = [8, 0], sizes = [32, 32], strides = [1, 1]} : vector<48x32xf32> to vector<32x32xf32>
    %40 = arith.truncf %38 : vector<32x32xf32> to vector<32x32xbf16>
    %c0_17 = arith.constant 0 : index
    %c0_18 = arith.constant 0 : index
    %41 = vector.load %arg8[%c0_17, %c0_18] : memref<32x32xbf16, #tpu.memory_space<vmem>>, vector<32x32xbf16>
    %cst_19 = arith.constant dense<0.000000e+00> : vector<32x32xf32>
    %42 = tpu.matmul %40, %41, %cst_19 {dimension_numbers = #tpu.dot_dimension_numbers<[1], [0], [0], [1], [0, 0, 1, 1], [], []>} : vector<32x32xbf16>, vector<32x32xbf16>, vector<32x32xf32> -> vector<32x32xf32>
    %c0_20 = arith.constant 0 : index
    %c0_21 = arith.constant 0 : index
    %43 = vector.load %arg9[%c0_20, %c0_21] : memref<1x32xf32, #tpu.memory_space<vmem>>, vector<1x32xf32>
    %44 = vector.broadcast %43 : vector<1x32xf32> to vector<32x32xf32>
    %45 = arith.addf %42, %44 : vector<32x32xf32>
    %46 = arith.addf %39, %45 : vector<32x32xf32>
    %c0_22 = arith.constant 0 : index
    %c0_23 = arith.constant 0 : index
    %47 = vector.load %arg10[%c0_22, %c0_23] : memref<1x32xf32, #tpu.memory_space<vmem>>, vector<1x32xf32>
    %c0_24 = arith.constant 0 : index
    %c0_25 = arith.constant 0 : index
    %48 = vector.load %arg11[%c0_24, %c0_25] : memref<1x32xf32, #tpu.memory_space<vmem>>, vector<1x32xf32>
    %cst_26 = arith.constant dense<0.000000e+00> : vector<32xf32>
    %49 = vector.multi_reduction <add>, %46, %cst_26 [1] : vector<32x32xf32> to vector<32xf32>
    %50 = vector.shape_cast %49 : vector<32xf32> to vector<32x1xf32>
    %cst_27 = arith.constant 3.200000e+01 : f32
    %51 = vector.broadcast %cst_27 : f32 to vector<32x1xf32>
    %52 = arith.divf %50, %51 : vector<32x1xf32>
    %53 = vector.broadcast %52 : vector<32x1xf32> to vector<32x32xf32>
    %54 = arith.subf %46, %53 : vector<32x32xf32>
    %55 = arith.mulf %54, %54 : vector<32x32xf32>
    %cst_28 = arith.constant dense<0.000000e+00> : vector<32xf32>
    %56 = vector.multi_reduction <add>, %55, %cst_28 [1] : vector<32x32xf32> to vector<32xf32>
    %57 = vector.shape_cast %56 : vector<32xf32> to vector<32x1xf32>
    %cst_29 = arith.constant 3.200000e+01 : f32
    %58 = vector.broadcast %cst_29 : f32 to vector<32x1xf32>
    %59 = arith.divf %57, %58 : vector<32x1xf32>
    %cst_30 = arith.constant 9.99999974E-6 : f32
    %60 = vector.broadcast %cst_30 : f32 to vector<32x1xf32>
    %61 = arith.addf %59, %60 : vector<32x1xf32>
    %62 = math.rsqrt %61 : vector<32x1xf32>
    %63 = vector.broadcast %62 : vector<32x1xf32> to vector<32x32xf32>
    %64 = arith.mulf %54, %63 : vector<32x32xf32>
    %65 = vector.broadcast %47 : vector<1x32xf32> to vector<32x32xf32>
    %66 = arith.mulf %64, %65 : vector<32x32xf32>
    %67 = vector.broadcast %48 : vector<1x32xf32> to vector<32x32xf32>
    %68 = arith.addf %66, %67 : vector<32x32xf32>
    %69 = arith.truncf %68 : vector<32x32xf32> to vector<32x32xbf16>
    %c0_31 = arith.constant 0 : index
    %c0_32 = arith.constant 0 : index
    %70 = vector.load %arg12[%c0_31, %c0_32] : memref<32x64xbf16, #tpu.memory_space<vmem>>, vector<32x64xbf16>
    %cst_33 = arith.constant dense<0.000000e+00> : vector<32x64xf32>
    %71 = tpu.matmul %69, %70, %cst_33 {dimension_numbers = #tpu.dot_dimension_numbers<[1], [0], [0], [1], [0, 0, 1, 1], [], []>} : vector<32x32xbf16>, vector<32x64xbf16>, vector<32x64xf32> -> vector<32x64xf32>
    %c0_34 = arith.constant 0 : index
    %c0_35 = arith.constant 0 : index
    %72 = vector.load %arg13[%c0_34, %c0_35] : memref<1x64xf32, #tpu.memory_space<vmem>>, vector<1x64xf32>
    %73 = vector.broadcast %72 : vector<1x64xf32> to vector<32x64xf32>
    %74 = arith.addf %71, %73 : vector<32x64xf32>
    %cst_36 = arith.constant 0.000000e+00 : f32
    %75 = vector.broadcast %cst_36 : f32 to vector<32x64xf32>
    %76 = arith.maximumf %74, %75 : vector<32x64xf32>
    %77 = arith.truncf %76 : vector<32x64xf32> to vector<32x64xbf16>
    %c0_37 = arith.constant 0 : index
    %c0_38 = arith.constant 0 : index
    %78 = vector.load %arg14[%c0_37, %c0_38] : memref<64x32xbf16, #tpu.memory_space<vmem>>, vector<64x32xbf16>
    %cst_39 = arith.constant dense<0.000000e+00> : vector<32x32xf32>
    %79 = tpu.matmul %77, %78, %cst_39 {dimension_numbers = #tpu.dot_dimension_numbers<[1], [0], [0], [1], [0, 0, 1, 1], [], []>} : vector<32x64xbf16>, vector<64x32xbf16>, vector<32x32xf32> -> vector<32x32xf32>
    %c0_40 = arith.constant 0 : index
    %c0_41 = arith.constant 0 : index
    %80 = vector.load %arg15[%c0_40, %c0_41] : memref<1x32xf32, #tpu.memory_space<vmem>>, vector<1x32xf32>
    %81 = vector.broadcast %80 : vector<1x32xf32> to vector<32x32xf32>
    %82 = arith.addf %79, %81 : vector<32x32xf32>
    %83 = arith.addf %68, %82 : vector<32x32xf32>
    %c0_42 = arith.constant 0 : index
    %c0_43 = arith.constant 0 : index
    %84 = vector.load %arg16[%c0_42, %c0_43] : memref<1x32xf32, #tpu.memory_space<vmem>>, vector<1x32xf32>
    %c0_44 = arith.constant 0 : index
    %c0_45 = arith.constant 0 : index
    %85 = vector.load %arg17[%c0_44, %c0_45] : memref<1x32xf32, #tpu.memory_space<vmem>>, vector<1x32xf32>
    %cst_46 = arith.constant dense<0.000000e+00> : vector<32xf32>
    %86 = vector.multi_reduction <add>, %83, %cst_46 [1] : vector<32x32xf32> to vector<32xf32>
    %87 = vector.shape_cast %86 : vector<32xf32> to vector<32x1xf32>
    %cst_47 = arith.constant 3.200000e+01 : f32
    %88 = vector.broadcast %cst_47 : f32 to vector<32x1xf32>
    %89 = arith.divf %87, %88 : vector<32x1xf32>
    %90 = vector.broadcast %89 : vector<32x1xf32> to vector<32x32xf32>
    %91 = arith.subf %83, %90 : vector<32x32xf32>
    %92 = arith.mulf %91, %91 : vector<32x32xf32>
    %cst_48 = arith.constant dense<0.000000e+00> : vector<32xf32>
    %93 = vector.multi_reduction <add>, %92, %cst_48 [1] : vector<32x32xf32> to vector<32xf32>
    %94 = vector.shape_cast %93 : vector<32xf32> to vector<32x1xf32>
    %cst_49 = arith.constant 3.200000e+01 : f32
    %95 = vector.broadcast %cst_49 : f32 to vector<32x1xf32>
    %96 = arith.divf %94, %95 : vector<32x1xf32>
    %cst_50 = arith.constant 9.99999974E-6 : f32
    %97 = vector.broadcast %cst_50 : f32 to vector<32x1xf32>
    %98 = arith.addf %96, %97 : vector<32x1xf32>
    %99 = math.rsqrt %98 : vector<32x1xf32>
    %100 = vector.broadcast %99 : vector<32x1xf32> to vector<32x32xf32>
    %101 = arith.mulf %91, %100 : vector<32x32xf32>
    %102 = vector.broadcast %84 : vector<1x32xf32> to vector<32x32xf32>
    %103 = arith.mulf %101, %102 : vector<32x32xf32>
    %104 = vector.broadcast %85 : vector<1x32xf32> to vector<32x32xf32>
    %105 = arith.addf %103, %104 : vector<32x32xf32>
    %c0_51 = arith.constant 0 : index
    %c0_52 = arith.constant 0 : index
    %106 = vector.load %arg18[%c0_51, %c0_52] : memref<32x32xf32, #tpu.memory_space<vmem>>, vector<32x32xf32>
    tpu.vector_store %arg18[%c0_51, %c0_52], %105 {strides = array<i32>} : memref<32x32xf32, #tpu.memory_space<vmem>>, vector<32x32xf32>,
    return
  }
  func.func @transform_0(%arg0: i32) -> (i32, i32, i32) {
    %c0_i32 = arith.constant 0 : i32
    %c0_i32_0 = arith.constant 0 : i32
    %c0_i32_1 = arith.constant 0 : i32
    return %arg0, %c0_i32, %c0_i32_0 : i32, i32, i32
  }
  func.func @transform_1(%arg0: i32) -> (i32, i32, i32) {
    %c0_i32 = arith.constant 0 : i32
    %c0_i32_0 = arith.constant 0 : i32
    %c0_i32_1 = arith.constant 0 : i32
    return %arg0, %c0_i32, %c0_i32_0 : i32, i32, i32
  }
  func.func @transform_2(%arg0: i32) -> (i32, i32) {
    %c0_i32 = arith.constant 0 : i32
    %c0_i32_0 = arith.constant 0 : i32
    %c0_i32_1 = arith.constant 0 : i32
    return %c0_i32, %c0_i32_0 : i32, i32
  }
  func.func @transform_3(%arg0: i32) -> (i32, i32) {
    %c0_i32 = arith.constant 0 : i32
    %c0_i32_0 = arith.constant 0 : i32
    %c0_i32_1 = arith.constant 0 : i32
    return %c0_i32, %c0_i32_0 : i32, i32
  }
  func.func @transform_4(%arg0: i32) -> (i32, i32) {
    %c0_i32 = arith.constant 0 : i32
    %c0_i32_0 = arith.constant 0 : i32
    %c0_i32_1 = arith.constant 0 : i32
    return %c0_i32, %c0_i32_0 : i32, i32
  }
  func.func @transform_5(%arg0: i32) -> (i32, i32) {
    %c0_i32 = arith.constant 0 : i32
    %c0_i32_0 = arith.constant 0 : i32
    %c0_i32_1 = arith.constant 0 : i32
    return %c0_i32, %c0_i32_0 : i32, i32
  }
  func.func @transform_6(%arg0: i32) -> (i32, i32) {
    %c0_i32 = arith.constant 0 : i32
    %c0_i32_0 = arith.constant 0 : i32
    %c0_i32_1 = arith.constant 0 : i32
    return %c0_i32, %c0_i32_0 : i32, i32
  }
  func.func @transform_7(%arg0: i32) -> (i32, i32) {
    %c0_i32 = arith.constant 0 : i32
    %c0_i32_0 = arith.constant 0 : i32
    %c0_i32_1 = arith.constant 0 : i32
    return %c0_i32, %c0_i32_0 : i32, i32
  }
  func.func @transform_8(%arg0: i32) -> (i32, i32) {
    %c0_i32 = arith.constant 0 : i32
    %c0_i32_0 = arith.constant 0 : i32
    %c0_i32_1 = arith.constant 0 : i32
    return %c0_i32, %c0_i32_0 : i32, i32
  }
  func.func @transform_9(%arg0: i32) -> (i32, i32) {
    %c0_i32 = arith.constant 0 : i32
    %c0_i32_0 = arith.constant 0 : i32
    %c0_i32_1 = arith.constant 0 : i32
    return %c0_i32, %c0_i32_0 : i32, i32
  }
  func.func @transform_10(%arg0: i32) -> (i32, i32) {
    %c0_i32 = arith.constant 0 : i32
    %c0_i32_0 = arith.constant 0 : i32
    %c0_i32_1 = arith.constant 0 : i32
    return %c0_i32, %c0_i32_0 : i32, i32
  }
  func.func @transform_11(%arg0: i32) -> (i32, i32) {
    %c0_i32 = arith.constant 0 : i32
    %c0_i32_0 = arith.constant 0 : i32
    %c0_i32_1 = arith.constant 0 : i32
    return %c0_i32, %c0_i32_0 : i32, i32
  }
  func.func @transform_12(%arg0: i32) -> (i32, i32) {
    %c0_i32 = arith.constant 0 : i32
    %c0_i32_0 = arith.constant 0 : i32
    %c0_i32_1 = arith.constant 0 : i32
    return %c0_i32, %c0_i32_0 : i32, i32
  }
  func.func @transform_13(%arg0: i32) -> (i32, i32) {
    %c0_i32 = arith.constant 0 : i32
    %c0_i32_0 = arith.constant 0 : i32
    %c0_i32_1 = arith.constant 0 : i32
    return %c0_i32, %c0_i32_0 : i32, i32
  }
  func.func @transform_14(%arg0: i32) -> (i32, i32) {
    %c0_i32 = arith.constant 0 : i32
    %c0_i32_0 = arith.constant 0 : i32
    %c0_i32_1 = arith.constant 0 : i32
    return %c0_i32, %c0_i32_0 : i32, i32
  }
  func.func @transform_15(%arg0: i32) -> (i32, i32) {
    %c0_i32 = arith.constant 0 : i32
    %c0_i32_0 = arith.constant 0 : i32
    %c0_i32_1 = arith.constant 0 : i32
    return %c0_i32, %c0_i32_0 : i32, i32
  }
  func.func @transform_16(%arg0: i32) -> (i32, i32) {
    %c0_i32 = arith.constant 0 : i32
    %c0_i32_0 = arith.constant 0 : i32
    %c0_i32_1 = arith.constant 0 : i32
    return %c0_i32, %c0_i32_0 : i32, i32
  }
  func.func @transform_17(%arg0: i32) -> (i32, i32) {
    %c0_i32 = arith.constant 0 : i32
    %c0_i32_0 = arith.constant 0 : i32
    return %arg0, %c0_i32 : i32, i32
  }
}

</mosaic_0001>

<bundles_post_ra>
// kernel: tpu_custom_call.1
= control target key start
LH: loop header
LB: loop body
LE: loop exit
PB: predicated region body
PF: predicated region fallthrough
CT: control target
= control target key end

     0   :  { %s1693_s24 = smov 0   ;;  %s1853_s0 = inlined_call_operand.vmem [shape: f32[2,48,32], index: 0, kind: input, shape index: {}]   ;;  %s1854_s1 = inlined_call_operand.vmem [shape: bf16[2,48,1], index: 1, kind: input, shape index: {}]   ;;  %s1855_s2 = inlined_call_operand.vmem [shape: bf16[32,32], index: 2, kind: input, shape index: {}]   ;;  %s1856_s3 = inlined_call_operand.vmem [shape: bf16[32,32], index: 3, kind: input, shape index: {}]   ;;  %s1857_s4 = inlined_call_operand.vmem [shape: f32[1,32], index: 4, kind: input, shape index: {}]   ;;  %s1858_s5 = inlined_call_operand.vmem [shape: f32[1,32], index: 5, kind: input, shape index: {}]   ;;  %s1859_s6 = inlined_call_operand.vmem [shape: f32[3,32], index: 6, kind: input, shape index: {}]   ;;  %s1860_s7 = inlined_call_operand.vmem [shape: bf16[32,32], index: 7, kind: input, shape index: {}]   ;;  %s1861_s8 = inlined_call_operand.vmem [shape: f32[1,32], index: 8, kind: input, shape index: {}]   ;;  %s1862_s9 = inlined_call_operand.vmem [shape: f32[1,32], index: 9, kind: input, shape index: {}]   ;;  %s1863_s10 = inlined_call_operand.vmem [shape: f32[1,32], index: 10, kind: input, shape index: {}]   ;;  %s1864_s11 = inlined_call_operand.vmem [shape: bf16[32,64], index: 11, kind: input, shape index: {}]   ;;  %s1865_s12 = inlined_call_operand.vmem [shape: f32[1,64], index: 12, kind: input, shape index: {}]   ;;  %s1866_s13 = inlined_call_operand.vmem [shape: bf16[64,32], index: 13, kind: input, shape index: {}]   ;;  %s1867_s14 = inlined_call_operand.vmem [shape: f32[1,32], index: 14, kind: input, shape index: {}]   ;;  %s1868_s15 = inlined_call_operand.vmem [shape: f32[1,32], index: 15, kind: input, shape index: {}]   ;;  %s1869_s16 = inlined_call_operand.vmem [shape: f32[1,32], index: 16, kind: input, shape index: {}]   ;;  %s1870_s17 = inlined_call_operand.vmem [shape: f32[64,32], index: 17, kind: output, shape index: {}]  }
   0x1   :  { %1871 = sst [smem:[#allocation2_spill]] %s1853_s0 }
   0x2   :  { %1872 = sst [smem:[#allocation3_spill]] %s1854_s1 }
   0x3 LB: > { %s1699_s25 = sadd.s32 4294967295, %s1598_s24   ;;  %p1367_p0 = scmp.ge.s32.totalorder %s1598_s24, 1  ;;  %s1598_s24 = sphi %s1693_s24, %s27_s24  }
   0x4   : > { %p497_p1 = scmp.lt.s32.totalorder %s1598_s24, 3 }
   0x6   : > { %p498_p2 = pnand %p1367_p0, %p497_p1 }
   0x7   : > { %p554_p3 = scmp.lt.s32.totalorder (!%p498_p2), %s1699_s25, 1  ;;  %s1873_s22 = sld [smem:[#allocation2_spill]] (!%p498_p2) }
   0x8   : > { %501 = sbr.rel (%p498_p2) target bundleno = 1527 (0x5f7), region = 88  ;;  %s1874_s28 = sld [smem:[#allocation3_spill]] (!%p498_p2) }
   0xd   : > { %v1540_v0 = vld [vmem:[%s1855_s2 + $0x8] sm:$0xff]   ;;  %v1600_v1 = vmov 0.0   ;;  %v1541_v2 = vld [vmem:[%s1855_s2] sm:$0xff]   ;;  %vm1601_vm0 = vmmov 0   ;;  %s555_s0 = scalar_select %p554_p3, %s1699_s25, 1  ;;  %v1602_v3 = vmov 0  }
   0xe   : > { %1511 = vmatprep.subr.bf16.mxu1 %v1600_v1  ;;  %1451 = vmatprep.subr.bf16.mxu0 %v1600_v1  ;;  %v1542_v4 = vld [vmem:[%s1856_s3 + $0x8] sm:$0xff]   ;;  %vm603_vm1 = vcmask 261120   ;;  %v1543_v18 = vld [vmem:[%s1856_s3] sm:$0xff]   ;;  %vm1157_vm2 = vcmask 523264  }
   0xf   : > { %1513 = vmatpush3.bf16.msra.mxu1 %v1540_v0  ;;  %1463 = vmatprep.mubr.msk.bf16.mxu1 %vm1601_vm0, %v1600_v1  ;;  %s1515_s30 = smul.u32 48, %s555_s0  ;;  %v1544_v26 = vld [vmem:[%s1860_s7 + $0x8] sm:$0xff]   ;;  %v1545_v27 = vld [vmem:[%s1860_s7] sm:$0xff]  }
  0x10   : > { %1512 = vmatprep.subr.bf16.mxu1 %v1600_v1  ;;  %1452 = vmatpush3.bf16.msra.mxu0 %v1540_v0  ;;  %s1516_s1 = smul.u32 24, %s555_s0  ;;  %v1378_v34 = vld [vmem:[%s1858_s5] ss:$0 sm:$0xff] }
  0x11   : > { %1453 = vmatprep.subr.bf16.mxu0 %v1600_v1  ;;  %1455 = vmatprep.mubr.msk.bf16.mxu0 %vm1601_vm0, %v1600_v1  ;;  %s1719_s23 = scalar_lea.vmem %s1873_s22, %s1515_s30 }
  0x12   : > { %1528 = vset.pattern.permute.xlu0 %v1602_v3  ;;  %1539 = vset.pattern.permute.xlu1 %v1602_v3  ;;  %v1722_v5 = vld [vmem:[%s1719_s23 + $0x20] sm:$0xff]  ;;  %v576_v6 = vld [vmem:[%s1719_s23 + $0x28] sm:$0xff]  ;;  %s563_s29 = scalar_lea.vmem %s1874_s28, %s1516_s1  ;;  %v1742_v23 = vld [vmem:[%s1719_s23 + $0x10] sm:$0xff] }
  0x13   : > { %1514 = vmatpush3.bf16.msra.mxu1 %v1541_v2  ;;  %v571_v7 = vld [vmem:[%s1719_s23] sm:$0xff]  ;;  %v579_v8 = vpack.c.bf16 %v576_v6, %v1722_v5  ;;  %v1731_v9 = vld [vmem:[%s1719_s23 + $0x8] sm:$0xff]  ;;  %v1426_v13 = vld [vmem:[%s563_s29 + $0x10] sm:$0xff]  }
  0x14   : > { %1467 = vmatprep.subr.bf16.mxu1 %v1600_v1  ;;  %1454 = vmatpush3.bf16.msra.mxu0 %v1541_v2  ;;  %v577_v10 = vpack.c.bf16 %v1731_v9, %v571_v7  ;;  %v1414_v11 = vld [vmem:[%s563_s29] sm:$0xff]   ;;  %v1425_v12 = vld [vmem:[%s563_s29 + $0x8] sm:$0xff]   ;;  %v1423_v19 = vunpack.c.l.bf16 %v1426_v13  ;;  %v1424_v21 = vunpack.c.h.bf16 %v1426_v13  ;;  %v1745_v24 = vld [vmem:[%s1719_s23 + $0x18] sm:$0xff]  ;;  %s1370_s23 = sshll.u32 %s1699_s25, 2 }
  0x15   : > { %v1415_v14 = vunpack.c.l.bf16 %v1414_v11  ;;  %v1416_v15 = vunpack.c.h.bf16 %v1414_v11  ;;  %v1419_v16 = vunpack.c.l.bf16 %v1425_v12  ;;  %v1420_v17 = vunpack.c.h.bf16 %v1425_v12  ;;  %1483 = vmatprep.subr.bf16.mxu0 %v1544_v26  ;;  %v1372_v12 = vld [vmem:[%s1857_s4] ss:$0 sm:$0xff]  ;;  %p565_p4 = scmp.lt.s32.totalorder %s1370_s23, 7 }
  0x16   : > { %1464 = vmatmul.mubr.msk.bf16.vlgmr.msra.gmra.mxu1 %vm603_vm1, %v579_v8  ;;  %826 = vperm.xlu1 %1539, %v1423_v19   ;;  %v578_v25 = vpack.c.bf16 %v1745_v24, %v1742_v23  ;;  %v841_v11 = vlaneseq }
  0x17   : > { %1468 = vmatpush3.bf16.msra.mxu1 %v1542_v4  ;;  %1471 = vmatprep.mubr.msk.bf16.mxu1 %vm1601_vm0, %v1600_v1  ;;  %v1529_v20 = vpack.i.bf16 %v1416_v15, %v1415_v14  ;;  %v1534_v22 = vpack.i.bf16 %v1420_v17, %v1419_v16  ;;  %s1876_s23 = smov (!%p565_p4, %s1370_s23), 7 }
  0x18   : > { %1469 = vmatprep.subr.bf16.mxu1 %v1600_v1  ;;  %1456 = vmatmul.mubr.msk.bf16.vlgmr.msra.gmra.mxu0 %vm603_vm1, %v577_v10  ;;  %v842_v17 = vshrl.u32 %v841_v11, 7  ;;  %s1371_s28 = sshll.u32 %s1876_s23, 3 }
  0x19   : > { %1459 = vmatprep.mubr.msk.bf16.mxu0 %vm1601_vm0, %v1600_v1  ;;  %1530 = vperm.xlu0 %1528, %v1529_v20   ;;  %s568_s18 = scalar_lea.vmem %s1870_s17, %s1371_s28 }
  0x1a   : > { %831 = vperm.xlu1 %1539, %v1424_v21   ;;  %1484 = vmatpush3.bf16.msra.mxu0 %v1544_v26 }
  0x1b   : > { %1470 = vmatpush3.bf16.msra.mxu1 %v1543_v18  ;;  %1485 = vmatprep.subr.bf16.mxu0 %v1545_v27 }
  0x1d   : > { %1535 = vperm.xlu0 %1528, %v1534_v22  }
  0x1e   : > { %1472 = vmatmul.mubr.msk.bf16.vlgmr.msra.gmra.mxu1 %vm603_vm1, %v577_v10  ;;  %1486 = vmatpush3.bf16.msra.mxu0 %v1545_v27  ;;  %v851_v27 = vsub.s32 1, %v842_v17 }
  0x1f   : > { %1475 = vmatprep.mubr.msk.bf16.mxu1 %vm1601_vm0, %v1600_v1 }
  0x20   : > { %1460 = vmatmul.mubr.msk.bf16.gmra.mxu0 %vm603_vm1, %v578_v25 }
  0x26   : > { %1476 = vmatmul.mubr.msk.bf16.gmra.mxu1 %vm603_vm1, %v578_v25 }
  0x27   : > { %1479 = vmatprep.mubr.msk.bf16.mxu1 %vm1601_vm0, %v1600_v1 }
  0x2e   : > { %1480 = vmatmul.mubr.msk.bf16.gmra.mxu1 %vm603_vm1, %v579_v8 }
  0x94   : > { %v1531_v13 = vpop.permute.xlu0 %1530 }
  0x95   : > { %v1533_v25 = vunpack.i.h.bf16 %v1531_v13 }
  0x98   : > { %v1536_v21 = vpop.permute.xlu0 %1535 }
  0xd6   : > { %v1761_v28 = vpop.f32.mrf.mxu1 }
  0xd8   : > { %v1465_v29 = vpop.f32.mrf.mxu1  ;;  %v647_v30 = vpop.f32.mrf.mxu0 }
  0xd9   : > { %v648_v19 = vadd.f32 %v1372_v12, %v647_v30 }
  0xda   : > { %v1763_v31 = vpop.f32.mrf.mxu1  ;;  %v1457_v32 = vpop.f32.mrf.mxu0 }
  0xdc   : > { %v1466_v33 = vpop.f32.mrf.mxu1  ;;  %v650_v35 = vpop.f32.mrf.mxu0 }
  0xdd   : > { %v651_v15 = vadd.f32 %v1372_v12, %v650_v35  ;;  %v843_v33 = vsub.s32 0, %v842_v17  ;;  %v1532_v35 = vunpack.i.l.bf16 %v1531_v13 }
  0xde   : > { %v727_v36 = vpop.f32.mrf.mxu1  ;;  %v1458_v37 = vpop.f32.mrf.mxu0 }
  0xdf   : > { %v728_v38 = vadd.f32 %v1378_v34, %v727_v36  ;;  %v840_v36 = vld [vmem:[%s1859_s6] sm:$0x7]  ;;  %v863_v37 = vsub.s32 2, %v842_v17 }
  0xe0   : > { %v1473_v39 = vpop.f32.mrf.mxu1  ;;  %v655_v40 = vpop.f32.mrf.mxu0 }
  0xe1   : > { %v1384_v41 = vmul.f32 -1.442695, %v728_v38  ;;  %v656_v29 = vadd.f32 %v1372_v12, %v655_v40  ;;  %v1537_v38 = vunpack.i.l.bf16 %v1536_v21  ;;  %v864_v40 = vrot.slane %v840_v36, %v863_v37 }
  0xe2   : > { %v730_v42 = vpop.f32.mrf.mxu1  ;;  %v1461_v43 = vpop.f32.mrf.mxu0 }
  0xe3   : > { %1552 = vpow2.f32 %v1384_v41  ;;  %v731_v44 = vadd.f32 %v1378_v34, %v730_v42  ;;  %v852_v41 = vrot.slane %v840_v36, %v851_v27 }
  0xe4   : > { %v1474_v45 = vpop.f32.mrf.mxu1  ;;  %v1768_v46 = vpop.f32.mrf.mxu0 }
  0xe5   : > { %v1385_v47 = vmul.f32 -1.442695, %v731_v44  ;;  %v659_v43 = vadd.f32 %v1372_v12, %v1768_v46  ;;  %v844_v44 = vrot.slane %v840_v36, %v843_v33  ;;  %v827_v46 = vpop.permute.xlu1 %826 }
  0xe6   : > { %v735_v48 = vpop.f32.mrf.mxu1  ;;  %v1462_v49 = vpop.f32.mrf.mxu0 }
  0xe7   : > { %1554 = vpow2.f32 %v1385_v47  ;;  %v736_v50 = vadd.f32 %v1378_v34, %v735_v48  ;;  %v1538_v47 = vunpack.i.h.bf16 %v1536_v21 }
  0xe8   : > { %v1477_v51 = vpop.f32.mrf.mxu1 }
  0xe9   : > { %v1386_v52 = vmul.f32 -1.442695, %v736_v50 }
  0xea   : > { %v738_v53 = vpop.f32.mrf.mxu1 }
  0xeb   : > { %1556 = vpow2.f32 %v1386_v52  ;;  %v739_v54 = vadd.f32 %v1378_v34, %v738_v53 }
  0xec   : > { %v1478_v55 = vpop.f32.mrf.mxu1 }
  0xed   : > { %v1387_v56 = vmul.f32 -1.442695, %v739_v54 }
  0xee   : > { %v743_v57 = vpop.f32.mrf.mxu1 }
  0xef   : > { %1558 = vpow2.f32 %v1387_v56  ;;  %v744_v58 = vadd.f32 %v1378_v34, %v743_v57  ;;  %v664_v57 = vadd.f32 %v1372_v12, %v1761_v28 }
  0xf0   : > { %v1553_v59 = vpop.eup %1552  ;;  %v1481_v60 = vpop.f32.mrf.mxu1 }
  0xf1   : > { %v1388_v61 = vmul.f32 -1.442695, %v744_v58  ;;  %v768_v62 = vadd.f32 1.0, %v1553_v59 }
  0xf2   : > { %v746_v63 = vpop.f32.mrf.mxu1 }
  0xf3   : > { %v747_v0 = vadd.f32 %v1378_v34, %v746_v63  ;;  %1560 = vpow2.f32 %v1388_v61 }
  0xf4   : > { %v1555_v1 = vpop.eup %1554  ;;  %v1482_v2 = vpop.f32.mrf.mxu1  ;;  %1562 = vrcp.f32 %v768_v62 }
  0xf5   : > { %v769_v3 = vadd.f32 1.0, %v1555_v1  ;;  %v1389_v4 = vmul.f32 -1.442695, %v747_v0  ;;  %v667_v1 = vadd.f32 %v1372_v12, %v1763_v31  ;;  %v1390_v12 = vld [vmem:[%s1861_s8] ss:$0 sm:$0xff] }
  0xf7   : > { %1564 = vrcp.f32 %v769_v3 }
  0xf8   : > { %v1557_v6 = vpop.eup %1556  ;;  %1566 = vpow2.f32 %v1389_v4 }
  0xf9   : > { %v770_v7 = vadd.f32 1.0, %v1557_v6 }
  0xfb   : > { %1568 = vrcp.f32 %v770_v7 }
  0xfc   : > { %v1559_v8 = vpop.eup %1558 }
  0xfd   : > { %v771_v10 = vadd.f32 1.0, %v1559_v8 }
  0xff   : > { %1570 = vrcp.f32 %v771_v10  ;;  %v832_v10 = vpop.permute.xlu1 %831 }
 0x100   : > { %v1561_v14 = vpop.eup %1560 }
 0x101   : > { %v772_v16 = vadd.f32 1.0, %v1561_v14  ;;  %v1563_v18 = vpop.eup %1562 }
 0x102   : > { %v786_v34 = vmul.f32 %v1563_v18, %v648_v19 }
 0x103   : > { %1572 = vrcp.f32 %v772_v16 }
 0x104   : > { %v1565_v20 = vpop.eup %1564  ;;  %v834_v45 = vmul.f32 %v1532_v35, %v786_v34 }
 0x105   : > { %v1567_v22 = vpop.eup %1566  ;;  %v787_v26 = vmul.f32 %v1565_v20, %v651_v15 }
 0x106   : > { %v773_v32 = vadd.f32 1.0, %v1567_v22  ;;  %v845_v53 = vmul.f32 %v844_v44, %v834_v45 }
 0x107   : > { %v835_v30 = vmul.f32 %v1533_v25, %v787_v26 }
 0x108   : > { %v1569_v39 = vpop.eup %1568  ;;  %1574 = vrcp.f32 %v773_v32 }
 0x109   : > { %v788_v42 = vmul.f32 %v1569_v39, %v656_v29  ;;  %v853_v50 = vmul.f32 %v852_v41, %v835_v30  ;;  %v846_v54 = vmul.f32 %v844_v44, %v835_v30 }
 0x10b   : > { %v836_v48 = vmul.f32 %v1537_v38, %v788_v42  ;;  %v857_v59 = vadd.f32 %v853_v50, %v845_v53 }
 0x10c   : > { %v1571_v49 = vpop.eup %1570 }
 0x10d   : > { %v854_v51 = vmul.f32 %v852_v41, %v836_v48  ;;  %v789_v52 = vmul.f32 %v1571_v49, %v659_v43  ;;  %v865_v55 = vmul.f32 %v864_v40, %v836_v48  ;;  %v847_v28 = vmul.f32 %v844_v44, %v836_v48 }
 0x10f   : > { %v837_v56 = vmul.f32 %v1538_v47, %v789_v52  ;;  %v858_v60 = vadd.f32 %v854_v51, %v846_v54  ;;  %v869_v63 = vadd.f32 %v865_v55, %v857_v59  ;;  %v1548_v59 = vld [vmem:[%s1866_s13 + $0x18] sm:$0xff]  }
 0x110   : > { %v1573_v58 = vpop.eup %1572  ;;  %1499 = vmatprep.subr.bf16.mxu0 %v1548_v59 }
 0x111   : > { %v866_v61 = vmul.f32 %v864_v40, %v837_v56  ;;  %v790_v62 = vmul.f32 %v1573_v58, %v664_v57  ;;  %v855_v6 = vmul.f32 %v852_v41, %v837_v56  ;;  %v848_v11 = vmul.f32 %v844_v44, %v837_v56  ;;  %v1546_v57 = vld [vmem:[%s1864_s11 + $0x8] sm:$0xff]   ;;  %v1547_v58 = vld [vmem:[%s1864_s11] sm:$0xff]  }
 0x112   : > { %1491 = vmatprep.subr.bf16.mxu1 %v1546_v57 }
 0x113   : > { %v870_v0 = vadd.f32 %v866_v61, %v858_v60  ;;  %v838_v2 = vmul.f32 %v827_v46, %v790_v62  ;;  %v859_v15 = vadd.f32 %v855_v6, %v847_v28  ;;  %1492 = vmatpush3.bf16.msra.mxu1 %v1546_v57  ;;  %v1395_v28 = vld [vmem:[%s1862_s9] ss:$0 sm:$0xff] }
 0x114   : > { %1493 = vmatprep.subr.bf16.mxu1 %v1547_v58 }
 0x115   : > { %v1575_v3 = vpop.eup %1574  ;;  %v873_v4 = vpack.c.bf16 %v870_v0, %v869_v63  ;;  %v856_v7 = vmul.f32 %v852_v41, %v838_v2  ;;  %v867_v13 = vmul.f32 %v864_v40, %v838_v2 }
 0x116   : > { %v791_v8 = vmul.f32 %v1575_v3, %v667_v1 }
 0x117   : > { %1487 = vmatprep.mubr.msk.bf16.mxu0 %vm603_vm1, %v873_v4  ;;  %v860_v16 = vadd.f32 %v856_v7, %v848_v11  ;;  %v871_v18 = vadd.f32 %v867_v13, %v859_v15  ;;  %1494 = vmatpush3.bf16.msra.mxu1 %v1547_v58 }
 0x118   : > { %v839_v14 = vmul.f32 %v832_v10, %v791_v8 }
 0x11a   : > { %v868_v17 = vmul.f32 %v864_v40, %v839_v14 }
 0x11c   : > { %v872_v19 = vadd.f32 %v868_v17, %v860_v16  ;;  %v1396_v17 = vld [vmem:[%s1863_s10] ss:$0 sm:$0xff] }
 0x11e   : > { %v874_v20 = vpack.c.bf16 %v872_v19, %v871_v18 }
 0x120   : > { %1488 = vmatmul.mubr.msk.bf16.vlgmr.msra.gmra.mxu0 %vm603_vm1, %v874_v20 }
 0x121   : > { %1500 = vmatpush3.bf16.msra.mxu0 %v1548_v59 }
 0x1e0   : > { %v1489_v31 = vpop.f32.mrf.mxu0 }
 0x1e1   : > { %v947_v22 = vadd.f32 %v1489_v31, %v1390_v12 }
 0x1e2   : > { %v938_v21 = vpop.f32.mrf.mxu0 }
 0x1e3   : > { %v939_v25 = vadd.f32 %v1390_v12, %v938_v21  ;;  %v955_v36 = vadd.f32 %v947_v22, %v1745_v24 }
 0x1e4   : > { %v1490_v26 = vpop.f32.mrf.mxu0 }
 0x1e5   : > { %v953_v27 = vadd.f32 %v939_v25, %v1731_v9  ;;  %v950_v32 = vadd.f32 %v1490_v26, %v1390_v12  ;;  %v965_v38 = vsel %vm603_vm1, %v955_v36, 0.0 }
 0x1e6   : > { %v941_v29 = vpop.f32.mrf.mxu0 }
 0x1e7   : > { %v942_v33 = vadd.f32 %v1390_v12, %v941_v29  ;;  %v959_v34 = vsel %vm603_vm1, %v953_v27, 0.0  ;;  %v956_v39 = vadd.f32 %v950_v32, %v1722_v5  ;;  %v1549_v32 = vld [vmem:[%s1866_s13 + $0x10] sm:$0xff]  }
 0x1e8   : > { %960 = vadd.xlane.f32.xlu0 %v959_v34  ;;  %1501 = vmatprep.subr.bf16.mxu0 %v1549_v32  ;;  %v1551_v34 = vld [vmem:[%s1866_s13] sm:$0xff]  }
 0x1e9   : > { %v954_v35 = vadd.f32 %v942_v33, %v1742_v23  ;;  %v968_v9 = vsel %vm603_vm1, %v956_v39, 0.0  ;;  %1502 = vmatpush3.bf16.msra.mxu0 %v1549_v32  ;;  %v1550_v33 = vld [vmem:[%s1866_s13 + $0x8] sm:$0xff]  }
 0x1ea   : > { %1503 = vmatprep.subr.bf16.mxu0 %v1550_v33 }
 0x1eb   : > { %v962_v37 = vsel %vm603_vm1, %v954_v35, 0.0 }
 0x1ec   : > { %963 = vadd.xlane.f32.xlu1 %v962_v37  ;;  %966 = vadd.xlane.f32.xlu0 %v965_v38  ;;  %v1397_v37 = vld [vmem:[%s1865_s12] ss:$0 sm:$0xff] }
 0x1ed   : > { %1504 = vmatpush3.bf16.msra.mxu0 %v1550_v33 }
 0x1ee   : > { %1505 = vmatprep.subr.bf16.mxu0 %v1551_v34 }
 0x1f0   : > { %969 = vadd.xlane.f32.xlu0 %v968_v9 }
 0x1f1   : > { %1506 = vmatpush3.bf16.msra.mxu0 %v1551_v34 }
 0x271   : > { %v961_v30 = vpop.xlane.xlu0 %960 }
 0x272   : > { %v972_v41 = vmul.f32 0.03125, %v961_v30 }
 0x274   : > { %v976_v42 = vsub.f32 %v953_v27, %v972_v41 }
 0x275   : > { %v964_v43 = vpop.xlane.xlu1 %963  ;;  %v967_v44 = vpop.xlane.xlu0 %966 }
 0x276   : > { %v973_v24 = vmul.f32 0.03125, %v964_v43  ;;  %v974_v45 = vmul.f32 0.03125, %v967_v44  ;;  %v980_v40 = vmul.f32 %v976_v42, %v976_v42 }
 0x278   : > { %v977_v23 = vsub.f32 %v954_v35, %v973_v24  ;;  %v978_v47 = vsub.f32 %v955_v36, %v974_v45  ;;  %v984_v48 = vsel %vm603_vm1, %v980_v40, 0.0 }
 0x279   : > { %985 = vadd.xlane.f32.xlu1 %v984_v48  ;;  %v970_v49 = vpop.xlane.xlu0 %969  ;;  %v1402_v48 = vld [vmem:[%s1867_s14] ss:$0 sm:$0xff] }
 0x27a   : > { %v975_v5 = vmul.f32 0.03125, %v970_v49  ;;  %v981_v50 = vmul.f32 %v977_v23, %v977_v23  ;;  %v982_v51 = vmul.f32 %v978_v47, %v978_v47 }
 0x27c   : > { %v979_v52 = vsub.f32 %v956_v39, %v975_v5  ;;  %v987_v53 = vsel %vm603_vm1, %v981_v50, 0.0  ;;  %v990_v54 = vsel %vm603_vm1, %v982_v51, 0.0 }
 0x27d   : > { %988 = vadd.xlane.f32.xlu0 %v987_v53  ;;  %991 = vadd.xlane.f32.xlu1 %v990_v54 }
 0x27e   : > { %v983_v55 = vmul.f32 %v979_v52, %v979_v52 }
 0x280   : > { %v993_v56 = vsel %vm603_vm1, %v983_v55, 0.0 }
 0x281   : > { %994 = vadd.xlane.f32.xlu0 %v993_v56 }
 0x302   : > { %v986_v60 = vpop.xlane.xlu1 %985 }
 0x303   : > { %v996_v61 = vmul.f32 0.03125, %v986_v60 }
 0x305   : > { %v1000_v46 = vadd.f32 1e-05, %v996_v61 }
 0x306   : > { %v992_v62 = vpop.xlane.xlu1 %991  ;;  %v989_v63 = vpop.xlane.xlu0 %988 }
 0x307   : > { %1576 = vrsqrt.f32 %v1000_v46  ;;  %v998_v0 = vmul.f32 0.03125, %v992_v62  ;;  %v997_v1 = vmul.f32 0.03125, %v989_v63 }
 0x309   : > { %v1002_v2 = vadd.f32 1e-05, %v998_v0  ;;  %v1001_v3 = vadd.f32 1e-05, %v997_v1 }
 0x30a   : > { %v995_v4 = vpop.xlane.xlu0 %994 }
 0x30b   : > { %1578 = vrsqrt.f32 %v1002_v2  ;;  %v999_v6 = vmul.f32 0.03125, %v995_v4 }
 0x30c   : > { %1580 = vrsqrt.f32 %v1001_v3 }
 0x30d   : > { %v1003_v7 = vadd.f32 1e-05, %v999_v6 }
 0x30f   : > { %1582 = vrsqrt.f32 %v1003_v7 }
 0x314   : > { %v1577_v8 = vpop.eup %1576 }
 0x315   : > { %v1008_v10 = vmul.f32 %v1577_v8, %v976_v42 }
 0x317   : > { %v1018_v16 = vmul.f32 %v1395_v28, %v1008_v10 }
 0x318   : > { %v1579_v11 = vpop.eup %1578 }
 0x319   : > { %v1581_v13 = vpop.eup %1580  ;;  %v1010_v14 = vmul.f32 %v1579_v11, %v978_v47  ;;  %v1028_v12 = vadd.f32 %v1396_v17, %v1018_v16 }
 0x31a   : > { %v1009_v15 = vmul.f32 %v1581_v13, %v977_v23 }
 0x31b   : > { %v1020_v31 = vmul.f32 %v1395_v28, %v1010_v14 }
 0x31c   : > { %v1583_v18 = vpop.eup %1582  ;;  %v1019_v19 = vmul.f32 %v1395_v28, %v1009_v15 }
 0x31d   : > { %v1011_v20 = vmul.f32 %v1583_v18, %v979_v52  ;;  %v1030_v26 = vadd.f32 %v1396_v17, %v1020_v31 }
 0x31e   : > { %v1029_v21 = vadd.f32 %v1396_v17, %v1019_v19 }
 0x31f   : > { %v1021_v22 = vmul.f32 %v1395_v28, %v1011_v20 }
 0x320   : > { %v1032_v25 = vpack.c.bf16 %v1029_v21, %v1028_v12 }
 0x321   : > { %v1031_v27 = vadd.f32 %v1396_v17, %v1021_v22 }
 0x322   : > { %1495 = vmatprep.mubr.msk.bf16.mxu1 %vm603_vm1, %v1032_v25 }
 0x323   : > { %v1033_v29 = vpack.c.bf16 %v1031_v27, %v1030_v26 }
 0x325   : > { %1496 = vmatmul.mubr.msk.bf16.vlgmr.msra.gmra.mxu1 %vm603_vm1, %v1033_v29 }
 0x3e5   : > { %v1497_v36 = vpop.f32.mrf.mxu1 }
 0x3e6   : > { %v1106_v30 = vadd.f32 %v1497_v36, %v1397_v37 }
 0x3e7   : > { %v1097_v35 = vpop.f32.mrf.mxu1 }
 0x3e8   : > { %v1098_v39 = vadd.f32 %v1397_v37, %v1097_v35  ;;  %v1114_v45 = vmax.f32 %v1106_v30, 0.0  ;;  %v1409_v35 = vld [vmem:[%s1868_s15] ss:$0 sm:$0xff] }
 0x3e9   : > { %v1498_v38 = vpop.f32.mrf.mxu1 }
 0x3ea   : > { %v1109_v9 = vadd.f32 %v1498_v38, %v1397_v37  ;;  %v1112_v44 = vmax.f32 %v1098_v39, 0.0  ;;  %v1410_v38 = vld [vmem:[%s1869_s16] ss:$0 sm:$0xff] }
 0x3eb   : > { %v1100_v41 = vpop.f32.mrf.mxu1 }
 0x3ec   : > { %v1101_v42 = vadd.f32 %v1397_v37, %v1100_v41  ;;  %v1115_v43 = vmax.f32 %v1109_v9, 0.0 }
 0x3ee   : > { %v1113_v24 = vmax.f32 %v1101_v42, 0.0  ;;  %v1117_v23 = vpack.c.bf16 %v1115_v43, %v1114_v45 }
 0x3f0   : > { %v1116_v40 = vpack.c.bf16 %v1113_v24, %v1112_v44 }
 0x3f2   : > { %1507 = vmatprep.mubr.msk.bf16.mxu0 %vm1157_vm2, %v1116_v40 }
 0x3f3   : > { %1508 = vmatmul.mubr.msk.bf16.vlgmr.msra.gmra.mxu0 %vm1157_vm2, %v1117_v23 }
 0x4b3   : > { %v1509_v47 = vpop.f32.mrf.mxu0 }
 0x4b4   : > { %v1207_v5 = vadd.f32 %v1509_v47, %v1402_v48 }
 0x4b5   : > { %v1198_v49 = vpop.f32.mrf.mxu0 }
 0x4b6   : > { %v1199_v50 = vadd.f32 %v1402_v48, %v1198_v49  ;;  %v1215_v57 = vadd.f32 %v1207_v5, %v1030_v26 }
 0x4b7   : > { %v1510_v51 = vpop.f32.mrf.mxu0 }
 0x4b8   : > { %v1213_v52 = vadd.f32 %v1199_v50, %v1028_v12  ;;  %v1210_v54 = vadd.f32 %v1510_v51, %v1402_v48  ;;  %v1225_v60 = vsel %vm603_vm1, %v1215_v57, 0.0 }
 0x4b9   : > { %v1201_v53 = vpop.f32.mrf.mxu0 }
 0x4ba   : > { %v1202_v55 = vadd.f32 %v1402_v48, %v1201_v53  ;;  %v1219_v56 = vsel %vm603_vm1, %v1213_v52, 0.0  ;;  %v1216_v61 = vadd.f32 %v1210_v54, %v1031_v27 }
 0x4bb   : > { %1220 = vadd.xlane.f32.xlu1 %v1219_v56 }
 0x4bc   : > { %v1214_v58 = vadd.f32 %v1202_v55, %v1029_v21  ;;  %v1228_v46 = vsel %vm603_vm1, %v1216_v61, 0.0 }
 0x4be   : > { %v1222_v59 = vsel %vm603_vm1, %v1214_v58, 0.0 }
 0x4bf   : > { %1223 = vadd.xlane.f32.xlu0 %v1222_v59  ;;  %1226 = vadd.xlane.f32.xlu1 %v1225_v60 }
 0x4c3   : > { %1229 = vadd.xlane.f32.xlu0 %v1228_v46 }
 0x544   : > { %v1221_v62 = vpop.xlane.xlu1 %1220 }
 0x545   : > { %v1231_v63 = vmul.f32 0.03125, %v1221_v62 }
 0x547   : > { %v1235_v0 = vsub.f32 %v1213_v52, %v1231_v63 }
 0x548   : > { %v1224_v1 = vpop.xlane.xlu0 %1223  ;;  %v1227_v2 = vpop.xlane.xlu1 %1226 }
 0x549   : > { %v1232_v3 = vmul.f32 0.03125, %v1224_v1  ;;  %v1233_v4 = vmul.f32 0.03125, %v1227_v2  ;;  %v1239_v6 = vmul.f32 %v1235_v0, %v1235_v0 }
 0x54b   : > { %v1236_v7 = vsub.f32 %v1214_v58, %v1232_v3  ;;  %v1237_v8 = vsub.f32 %v1215_v57, %v1233_v4  ;;  %v1243_v10 = vsel %vm603_vm1, %v1239_v6, 0.0 }
 0x54c   : > { %v1230_v28 = vpop.xlane.xlu0 %1229  ;;  %1244 = vadd.xlane.f32.xlu1 %v1243_v10 }
 0x54d   : > { %v1234_v11 = vmul.f32 0.03125, %v1230_v28  ;;  %v1240_v13 = vmul.f32 %v1236_v7, %v1236_v7  ;;  %v1241_v14 = vmul.f32 %v1237_v8, %v1237_v8 }
 0x54f   : > { %v1238_v15 = vsub.f32 %v1216_v61, %v1234_v11  ;;  %v1246_v16 = vsel %vm603_vm1, %v1240_v13, 0.0  ;;  %v1249_v17 = vsel %vm603_vm1, %v1241_v14, 0.0 }
 0x550   : > { %1247 = vadd.xlane.f32.xlu0 %v1246_v16  ;;  %1250 = vadd.xlane.f32.xlu1 %v1249_v17 }
 0x551   : > { %v1242_v18 = vmul.f32 %v1238_v15, %v1238_v15 }
 0x553   : > { %v1252_v19 = vsel %vm603_vm1, %v1242_v18, 0.0 }
 0x554   : > { %1253 = vadd.xlane.f32.xlu0 %v1252_v19 }
 0x5d5   : > { %v1245_v20 = vpop.xlane.xlu1 %1244 }
 0x5d6   : > { %v1255_v31 = vmul.f32 0.03125, %v1245_v20 }
 0x5d8   : > { %v1259_v12 = vadd.f32 1e-05, %v1255_v31 }
 0x5d9   : > { %v1248_v21 = vpop.xlane.xlu0 %1247  ;;  %v1251_v22 = vpop.xlane.xlu1 %1250 }
 0x5da   : > { %1584 = vrsqrt.f32 %v1259_v12  ;;  %v1256_v25 = vmul.f32 0.03125, %v1248_v21  ;;  %v1257_v26 = vmul.f32 0.03125, %v1251_v22 }
 0x5dc   : > { %v1260_v27 = vadd.f32 1e-05, %v1256_v25  ;;  %v1261_v29 = vadd.f32 1e-05, %v1257_v26 }
 0x5dd   : > { %v1254_v32 = vpop.xlane.xlu0 %1253 }
 0x5de   : > { %1586 = vrsqrt.f32 %v1260_v27  ;;  %v1258_v33 = vmul.f32 0.03125, %v1254_v32 }
 0x5df   : > { %1588 = vrsqrt.f32 %v1261_v29 }
 0x5e0   : > { %v1262_v34 = vadd.f32 1e-05, %v1258_v33 }
 0x5e2   : > { %1590 = vrsqrt.f32 %v1262_v34 }
 0x5e7   : > { %v1585_v36 = vpop.eup %1584 }
 0x5e8   : > { %v1267_v37 = vmul.f32 %v1585_v36, %v1235_v0 }
 0x5ea   : > { %v1277_v39 = vmul.f32 %v1409_v35, %v1267_v37 }
 0x5eb   : > { %v1587_v9 = vpop.eup %1586 }
 0x5ec   : > { %v1589_v30 = vpop.eup %1588  ;;  %v1287_v41 = vadd.f32 %v1410_v38, %v1277_v39  ;;  %v1268_v42 = vmul.f32 %v1587_v9, %v1236_v7 }
 0x5ed   : > { %v1269_v43 = vmul.f32 %v1589_v30, %v1237_v8 }
 0x5ee   : > { %1291 = vst.msk [vmem:[%s568_s18] sm:$0xff] %vm603_vm1, %v1287_v41  ;;  %v1278_v44 = vmul.f32 %v1409_v35, %v1268_v42 }
 0x5ef   : > { %v1591_v24 = vpop.eup %1590  ;;  %v1279_v45 = vmul.f32 %v1409_v35, %v1269_v43 }
 0x5f0   : > { %v1288_v40 = vadd.f32 %v1410_v38, %v1278_v44  ;;  %v1270_v23 = vmul.f32 %v1591_v24, %v1238_v15 }
 0x5f1   : > { %v1289_v47 = vadd.f32 %v1410_v38, %v1279_v45 }
 0x5f2   : > { %1292 = vst.msk [vmem:[%s568_s18 + $0x8] sm:$0xff] %vm603_vm1, %v1288_v40  ;;  %v1280_v48 = vmul.f32 %v1409_v35, %v1270_v23 }
 0x5f3   : > { %1293 = vst.msk [vmem:[%s568_s18 + $0x10] sm:$0xff] %vm603_vm1, %v1289_v47 }
 0x5f4   : > { %v1290_v49 = vadd.f32 %v1410_v38, %v1280_v48 }
 0x5f6   : > { %1294 = vst.msk [vmem:[%s568_s18 + $0x18] sm:$0xff] %vm603_vm1, %v1290_v49 }
 0x5f7 PF: > { %s27_s24 = sadd.s32 1, %s1598_s24  }
 0x5f8   : > { %p24_p5 = scmp.ge.s32.totalorder %s27_s24, 4  }
 0x5fa   :  { %26 = sbr.rel (!%p24_p5) target bundleno = 3 (0x3), region = 121 }

</bundles_post_ra>
